<compile_context>
chip_gen: v7x
topology: tpu7x:2x2x1
jax: 0.10.0
libtpu: 0.0.40
codegen_flags: <defaults>
</compile_context>

<pallas_src>
import math

import jax
import jax.numpy as jnp
import numpy as np
from jax import lax
from jax.experimental import pallas as pl
from jax.experimental.pallas import tpu as pltpu

_NEG_INF = -1e30  # large finite negative: cheaper and safer than float('-inf')


def attention_kernel(x_ref, w_ref, b_ref, o_ref):
    """One grid step handles `bb` batch elements.

    x_ref: (bb, T, C)  input slice
    w_ref: (C, 3C)     fused, pre-transposed [Wk | Wq*scale | Wv]
    b_ref: (1, 3C)     fused bias [bk | bq*scale | bv], float32
    o_ref: (bb, T, C)  output slice
    """
    bb, T, C = x_ref.shape

    # Fused QKV projection: one MXU matmul with a 3C-wide (lane-dense) RHS.
    # (T is a multiple of 8 here, so the reshapes are tile-aligned no-ops.)
    x2 = x_ref[...].reshape(bb * T, C)
    qkv = jnp.dot(x2, w_ref[...], preferred_element_type=jnp.float32)
    qkv = (qkv + b_ref[...]).reshape(bb, T, 3 * C)
    k = qkv[:, :, 0:C]
    q = qkv[:, :, C:2 * C]        # 1/sqrt(C) already folded in (wrapper)
    v = qkv[:, :, 2 * C:3 * C]

    # attention_scores = K @ movedim(Q, 1, 2)  (scale folded into q).
    mm_dtype = x_ref.dtype        # bf16 inputs -> bf16 MXU; f32 -> no-op casts
    scores = jnp.einsum("btc,bsc->bts", k.astype(mm_dtype), q.astype(mm_dtype),
                        preferred_element_type=jnp.float32)

    # Causal mask, generated in-kernel and applied as an additive bias.
    row = lax.broadcasted_iota(jnp.int32, (T, T), 0)
    col = lax.broadcasted_iota(jnp.int32, (T, T), 1)
    mask_bias = jnp.where(row >= col, 0.0, _NEG_INF).astype(jnp.float32)
    scores = scores + mask_bias[None, :, :]

    # Numerically-stable softmax over the last dim; divide -> EUP reciprocal.
    scores = scores - jnp.max(scores, axis=-1, keepdims=True)
    p = jnp.exp(scores)
    s = jnp.sum(p, axis=-1, keepdims=True)
    inv = pl.reciprocal(s, approx=True)
    inv = inv * (2.0 - s * inv)   # one Newton step -> effectively exact 1/s
    p = p * inv

    # P @ V.
    out = jnp.einsum("bts,bsc->btc", p.astype(mm_dtype), v.astype(mm_dtype),
                     preferred_element_type=jnp.float32)
    o_ref[...] = out.astype(o_ref.dtype)


def attention_forward(x, wk, bk, wq, bq, wv, bv, *, batch_block=None):
    """x: (B, T, C); weights (C, C) in PyTorch (out,in) convention; biases (C,)."""
    B, T, C = x.shape
    if batch_block is None:
        batch_block = B               # whole problem in a single grid step
    assert B % batch_block == 0, "batch_block must divide B"

    scale = 1.0 / math.sqrt(C)
    # Pre-transpose (Linear computes x @ W^T), fuse K/Q/V along the lane dim,
    # and fold the 1/sqrt(layer_size) score scale into the Q projection.
    w_qkv = jnp.concatenate([wk.T, wq.T * scale, wv.T], axis=1).astype(x.dtype)
    b_qkv = jnp.concatenate([bk, bq * scale, bv]).reshape(1, 3 * C).astype(jnp.float32)

    # Advisory cost estimate for XLA scheduling around the custom call.
    flops = B * (6 * T * C * C + 4 * T * T * C)
    bytes_accessed = (2 * x.size * x.dtype.itemsize
                      + w_qkv.size * w_qkv.dtype.itemsize
                      + b_qkv.size * 4)

    return pl.pallas_call(
        attention_kernel,
        out_shape=jax.ShapeDtypeStruct((B, T, C), x.dtype),
        grid=(B // batch_block,),
        in_specs=[
            pl.BlockSpec((batch_block, T, C), lambda i: (i, 0, 0)),  # x
            pl.BlockSpec((C, 3 * C), lambda i: (0, 0)),              # fused W
            pl.BlockSpec((1, 3 * C), lambda i: (0, 0)),              # fused b
        ],
        out_specs=pl.BlockSpec((batch_block, T, C), lambda i: (i, 0, 0)),
        compiler_params=pltpu.CompilerParams(
            dimension_semantics=("parallel",)),
        cost_estimate=pl.CostEstimate(
            flops=int(flops),
            transcendentals=int(B * T * T),
            bytes_accessed=int(bytes_accessed)),
    )(x, w_qkv, b_qkv)


def _reference(x, wk, bk, wq, bq, wv, bv, block_size):
    """Pure-JAX mirror of the PyTorch forward, for correctness checking."""
    B, T, C = x.shape
    mask = jnp.tril(jnp.ones((block_size, block_size), jnp.float32))[:T, :T]
    K = x @ wk.T + bk
    Q = x @ wq.T + bq
    V = x @ wv.T + bv
    scores = jnp.einsum("btc,bsc->bts", K, Q) / math.sqrt(C)
    scores = jnp.where(mask[None, :, :] == 0, -jnp.inf, scores)
    p = jax.nn.softmax(scores, axis=-1)
    return jnp.einsum("bts,bsc->btc", p, V)


if __name__ == "__main__":
    # Small shapes consistent with the module: layer_size=C, block_size>=T.
    B, T, C = 2, 8, 32
    block_size = 8

    key = jax.random.PRNGKey(0)
    ks = jax.random.split(key, 7)

    # Deterministic init mimicking torch.nn.Linear (uniform +-1/sqrt(fan_in)).
    bound = 1.0 / math.sqrt(C)
    wk = jax.random.uniform(ks[0], (C, C), jnp.float32, -bound, bound)
    bk = jax.random.uniform(ks[1], (C,), jnp.float32, -bound, bound)
    wq = jax.random.uniform(ks[2], (C, C), jnp.float32, -bound, bound)
    bq = jax.random.uniform(ks[3], (C,), jnp.float32, -bound, bound)
    wv = jax.random.uniform(ks[4], (C, C), jnp.float32, -bound, bound)
    bv = jax.random.uniform(ks[5], (C,), jnp.float32, -bound, bound)

    x = jax.random.normal(ks[6], (B, T, C), jnp.float32)

    ref = _reference(x, wk, bk, wq, bq, wv, bv, block_size)

    # Default: whole batch in a single grid step (minimal per-step overhead).
    out = jax.block_until_ready(attention_forward(x, wk, bk, wq, bq, wv, bv))
    np.testing.assert_allclose(np.asarray(out), np.asarray(ref),
                               rtol=1e-3, atol=1e-3)

    # Chunked grid (>=2 parallel steps -> megacore sharding on v7x).
    out2 = jax.block_until_ready(
        attention_forward(x, wk, bk, wq, bq, wv, bv, batch_block=1))
    np.testing.assert_allclose(np.asarray(out2), np.asarray(ref),
                               rtol=1e-3, atol=1e-3)

    print("KERNEL_OK")
</pallas_src>

<mosaic_0001>
module attributes {stable_mosaic.version = 11 : i64} {
  func.func @attention_kernel(%arg0: i32, %arg1: memref<2x8x32xf32, #tpu.memory_space<vmem>>, %arg2: memref<32x96xf32, #tpu.memory_space<vmem>>, %arg3: memref<1x96xf32, #tpu.memory_space<vmem>>, %arg4: memref<2x8x32xf32, #tpu.memory_space<vmem>>) attributes {dimension_semantics = [#tpu.dimension_semantics<parallel>], iteration_bounds = array<i64: 1>, scalar_prefetch = 0 : i64, scratch_operands = 0 : i64, tpu.core_type = #tpu.core_type<tc>, window_params = [{transform_indices = @transform_0, window_bounds = array<i64: 2, 8, 32>}, {pipeline_mode = #tpu.pipeline_mode<synchronous>, transform_indices = @transform_1, window_bounds = array<i64: 32, 96>}, {pipeline_mode = #tpu.pipeline_mode<synchronous>, transform_indices = @transform_2, window_bounds = array<i64: 1, 96>}, {transform_indices = @transform_3, window_bounds = array<i64: 2, 8, 32>}]} {
    %c0 = arith.constant 0 : index
    %c0_0 = arith.constant 0 : index
    %c0_1 = arith.constant 0 : index
    %0 = vector.load %arg1[%c0, %c0_0, %c0_1] : memref<2x8x32xf32, #tpu.memory_space<vmem>>, vector<2x8x32xf32>
    %1 = vector.shape_cast %0 : vector<2x8x32xf32> to vector<16x32xf32>
    %c0_2 = arith.constant 0 : index
    %c0_3 = arith.constant 0 : index
    %2 = vector.load %arg2[%c0_2, %c0_3] : memref<32x96xf32, #tpu.memory_space<vmem>>, vector<32x96xf32>
    %cst = arith.constant dense<0.000000e+00> : vector<16x96xf32>
    %3 = tpu.matmul %1, %2, %cst {dimension_numbers = #tpu.dot_dimension_numbers<[1], [0], [0], [1], [0, 0, 1, 1], [], []>} : vector<16x32xf32>, vector<32x96xf32>, vector<16x96xf32> -> vector<16x96xf32>
    %c0_4 = arith.constant 0 : index
    %c0_5 = arith.constant 0 : index
    %4 = vector.load %arg3[%c0_4, %c0_5] : memref<1x96xf32, #tpu.memory_space<vmem>>, vector<1x96xf32>
    %5 = vector.broadcast %4 : vector<1x96xf32> to vector<16x96xf32>
    %6 = arith.addf %3, %5 : vector<16x96xf32>
    %7 = vector.shape_cast %6 : vector<16x96xf32> to vector<2x8x96xf32>
    %8 = vector.extract_strided_slice %7 {offsets = [0, 0, 0], sizes = [2, 8, 32], strides = [1, 1, 1]} : vector<2x8x96xf32> to vector<2x8x32xf32>
    %9 = vector.extract_strided_slice %7 {offsets = [0, 0, 32], sizes = [2, 8, 32], strides = [1, 1, 1]} : vector<2x8x96xf32> to vector<2x8x32xf32>
    %10 = vector.extract_strided_slice %7 {offsets = [0, 0, 64], sizes = [2, 8, 32], strides = [1, 1, 1]} : vector<2x8x96xf32> to vector<2x8x32xf32>
    "tpu.trace_start"() <{level = 10 : i32, message = "btc,bsc->bts"}> : () -> ()
    %cst_6 = arith.constant dense<0.000000e+00> : vector<2x8x8xf32>
    %11 = tpu.matmul %8, %9, %cst_6 {dimension_numbers = #tpu.dot_dimension_numbers<[2], [2], [1], [1], [0, 0, 0, 1, 1, 1], [0], [0]>} : vector<2x8x32xf32>, vector<2x8x32xf32>, vector<2x8x8xf32> -> vector<2x8x8xf32>
    "tpu.trace_stop"() : () -> ()
    %12 = tpu.iota {dimensions = array<i32: 0>} : vector<8x8xi32>
    %13 = tpu.iota {dimensions = array<i32: 1>} : vector<8x8xi32>
    %14 = arith.cmpi sge, %12, %13 : vector<8x8xi32>
    %cst_7 = arith.constant 0.000000e+00 : f32
    %cst_8 = arith.constant -1.000000e+30 : f32
    %15 = vector.broadcast %cst_7 : f32 to vector<8x8xf32>
    %16 = vector.broadcast %cst_8 : f32 to vector<8x8xf32>
    %17 = arith.select %14, %15, %16 : vector<8x8xi1>, vector<8x8xf32>
    %18 = vector.shape_cast %17 : vector<8x8xf32> to vector<1x8x8xf32>
    %19 = vector.broadcast %18 : vector<1x8x8xf32> to vector<2x8x8xf32>
    %20 = arith.addf %11, %19 : vector<2x8x8xf32>
    %cst_9 = arith.constant dense<0xFF800000> : vector<2x8xf32>
    %21 = vector.multi_reduction <maximumf>, %20, %cst_9 [2] : vector<2x8x8xf32> to vector<2x8xf32>
    %22 = vector.shape_cast %21 : vector<2x8xf32> to vector<2x8x1xf32>
    %23 = vector.broadcast %22 : vector<2x8x1xf32> to vector<2x8x8xf32>
    %24 = arith.subf %20, %23 : vector<2x8x8xf32>
    %25 = math.exp %24 : vector<2x8x8xf32>
    %cst_10 = arith.constant dense<0.000000e+00> : vector<2x8xf32>
    %26 = vector.multi_reduction <add>, %25, %cst_10 [2] : vector<2x8x8xf32> to vector<2x8xf32>
    %27 = vector.shape_cast %26 : vector<2x8xf32> to vector<2x8x1xf32>
    %28 = tpu.reciprocal %27 {approx = true} : vector<2x8x1xf32> -> vector<2x8x1xf32>
    %29 = arith.mulf %27, %28 : vector<2x8x1xf32>
    %cst_11 = arith.constant 2.000000e+00 : f32
    %30 = vector.broadcast %cst_11 : f32 to vector<2x8x1xf32>
    %31 = arith.subf %30, %29 : vector<2x8x1xf32>
    %32 = arith.mulf %28, %31 : vector<2x8x1xf32>
    %33 = vector.broadcast %32 : vector<2x8x1xf32> to vector<2x8x8xf32>
    %34 = arith.mulf %25, %33 : vector<2x8x8xf32>
    "tpu.trace_start"() <{level = 10 : i32, message = "bts,bsc->btc"}> : () -> ()
    %cst_12 = arith.constant dense<0.000000e+00> : vector<2x8x32xf32>
    %35 = tpu.matmul %34, %10, %cst_12 {dimension_numbers = #tpu.dot_dimension_numbers<[2], [1], [1], [2], [0, 0, 0, 1, 1, 2], [0], [0]>} : vector<2x8x8xf32>, vector<2x8x32xf32>, vector<2x8x32xf32> -> vector<2x8x32xf32>
    "tpu.trace_stop"() : () -> ()
    %c0_13 = arith.constant 0 : index
    %c0_14 = arith.constant 0 : index
    %c0_15 = arith.constant 0 : index
    %36 = vector.load %arg4[%c0_13, %c0_14, %c0_15] : memref<2x8x32xf32, #tpu.memory_space<vmem>>, vector<2x8x32xf32>
    tpu.vector_store %arg4[%c0_13, %c0_14, %c0_15], %35 {strides = array<i32>} : memref<2x8x32xf32, #tpu.memory_space<vmem>>, vector<2x8x32xf32>,
    return
  }
  func.func @transform_0(%arg0: i32) -> (i32, i32, i32) {
    %c0_i32 = arith.constant 0 : i32
    %c0_i32_0 = arith.constant 0 : i32
    %c0_i32_1 = arith.constant 0 : i32
    return %arg0, %c0_i32, %c0_i32_0 : i32, i32, i32
  }
  func.func @transform_1(%arg0: i32) -> (i32, i32) {
    %c0_i32 = arith.constant 0 : i32
    %c0_i32_0 = arith.constant 0 : i32
    %c0_i32_1 = arith.constant 0 : i32
    return %c0_i32, %c0_i32_0 : i32, i32
  }
  func.func @transform_2(%arg0: i32) -> (i32, i32) {
    %c0_i32 = arith.constant 0 : i32
    %c0_i32_0 = arith.constant 0 : i32
    %c0_i32_1 = arith.constant 0 : i32
    return %c0_i32, %c0_i32_0 : i32, i32
  }
  func.func @transform_3(%arg0: i32) -> (i32, i32, i32) {
    %c0_i32 = arith.constant 0 : i32
    %c0_i32_0 = arith.constant 0 : i32
    %c0_i32_1 = arith.constant 0 : i32
    return %arg0, %c0_i32, %c0_i32_0 : i32, i32, i32
  }
}

</mosaic_0001>

<bundles_post_ra>
// kernel: tpu_custom_call.1
= control target key start
LH: loop header
LB: loop body
LE: loop exit
PB: predicated region body
PF: predicated region fallthrough
CT: control target
= control target key end

     0   :  { %8 = vsyncpa [#allocation3], 0  ;;  %s747_s0 = inlined_call_operand.hbm [shape: f32[2,8,32], index: 0, kind: input, shape index: {}]   ;;  %s748_s1 = inlined_call_operand.hbm [shape: f32[32,96], index: 1, kind: input, shape index: {}]   ;;  %s749_s2 = inlined_call_operand.vmem [shape: f32[1,96], index: 2, kind: input, shape index: {}]   ;;  %s750_s3 = inlined_call_operand.hbm [shape: f32[2,8,32], index: 3, kind: output, shape index: {}]  }
   0x1   :  { %9 = vsyncpa [#allocation6], 0 }
   0x2   :  { %10 = vsyncpa [#allocation4], 0  ;;  %s651_s12 = smov [#allocation2]   ;;  %s579_s16 = scalar_lea.hbm %s747_s0, 256 }
   0x3   :  { %s16_s13 = sshll.u32 %s651_s12, 4  ;;  %p580_p0 = scmp.ne.s32.totalorder %s747_s0, %s579_s16  ;;  %s17_s13 = int_to_ptr.vmem [resolvable:$true] %s16_s13 }
   0x4   :  { %p583_p1 = scmp.lt.u32.totalorder %s579_s16, %s747_s0 }
   0x6   :  { %p585_p2 = pnand %p583_p1, %p580_p0 }
   0x8   :  { %588 = shalt.err (!%p585_p2)
}
   0x9   :  { %s589_s21 = scalar_lea.vmem %s17_s13, 256  ;;  %p594_p4 = scmp.lt.s32.totalorder %s17_s13, %s17_s13 }
   0xa   :  { %p590_p3 = scmp.ne.s32.totalorder %s17_s13, %s589_s21  ;;  %p595_p5 = scmp.lt.s32.totalorder %s589_s21, %s589_s21 }
   0xc   :  { %p596_p6 = por %p595_p5, %p594_p4 }
   0xe   :  { %p597_p7 = pnand %p596_p6, %p590_p3 }
  0x10   :  { %600 = shalt.err (!%p597_p7)
}
  0x11   :  { %s652_s22 = smov 128   ;;  %s653_s23 = smov 8  }
  0x12   :  { %22 = dma.hbm_to_vmem [thread:$0]  %s747_s0, 256, %s17_s13, [#allocation3], %s652_s22, %s652_s22, %s653_s23  }
  0x13   :  { %s654_s26 = smov [#allocation5]   ;;  %s601_s30 = scalar_lea.hbm %s748_s1, 512 }
  0x14   :  { %s28_s27 = sshll.u32 %s654_s26, 4  ;;  %p602_p8 = scmp.ne.s32.totalorder %s748_s1, %s601_s30  ;;  %s29_s27 = int_to_ptr.vmem [resolvable:$true] %s28_s27 }
  0x15   :  { %p605_p9 = scmp.lt.u32.totalorder %s601_s30, %s748_s1 }
  0x17   :  { %p607_p10 = pnand %p605_p9, %p602_p8 }
  0x19   :  { %610 = shalt.err (!%p607_p10)
}
  0x1a   :  { %s611_s8 = scalar_lea.vmem %s29_s27, 512  ;;  %p616_p12 = scmp.lt.s32.totalorder %s29_s27, %s29_s27 }
  0x1b   :  { %p612_p11 = scmp.ne.s32.totalorder %s29_s27, %s611_s8  ;;  %p617_p13 = scmp.lt.s32.totalorder %s611_s8, %s611_s8 }
  0x1d   :  { %p618_p0 = por %p617_p13, %p616_p12 }
  0x1f   :  { %p619_p1 = pnand %p618_p0, %p612_p11 }
  0x21   :  { %622 = shalt.err (!%p619_p1)
}
  0x22   :  { %34 = dma.hbm_to_vmem [thread:$0]  %s748_s1, 512, %s29_s27, [#allocation6], %s652_s22, %s652_s22, %s653_s23  }
  0x23   :  { %645 = dma.done.wait [#allocation3], 256  }
  0x24   :  { %646 = vsyncadd [#allocation3], 4294967040 }
  0x25   :  { %647 = dma.done.wait [#allocation6], 512  }
  0x26   :  { %648 = vsyncadd [#allocation6], 4294966784  ;;  %vm56_vm0 = vcmask 261120   ;;  %v45_v0 = vld [vmem:[#allocation5] sm:$0xff]  ;;  %v46_v1 = vld [vmem:[#allocation5 + $0x8] sm:$0xff]  ;;  %v655_v8 = vmov 0.0   ;;  %v138_v16 = vlaneseq }
  0x27   :  { %v47_v2 = vld [vmem:[#allocation5 + $0x10] sm:$0xff]  ;;  %v553_v3 = vpack.c.bf16 %v46_v1, %v45_v0  ;;  %v48_v4 = vld [vmem:[#allocation5 + $0x18] sm:$0xff]  ;;  %533 = vmatprep.subr.mxu1 %v655_v8  ;;  %vm656_vm1 = vmmov 0   ;;  %s657_s11 = smov 96   ;;  %v658_v19 = vmov -1e+30  }
  0x28   :  { %v43_v5 = vld [vmem:[#allocation2] sm:$0xff]  ;;  %v557_v6 = vpack.c.bf16 %v48_v4, %v47_v2  ;;  %v44_v7 = vld [vmem:[#allocation2 + $0x8] sm:$0xff]  ;;  %535 = vmatprep.mubr.msk.f32.mxu1 %vm656_vm1, %v655_v8  ;;  %v139_v17 = vshrl.u32 %v138_v16, 7  ;;  %v141_v18 = vand.u32 127, %v138_v16  ;;  %vm298_vm3 = vcmask 64512   ;;  %s660_s12 = smov [#allocation7]  }
  0x29   :  { %530 = vmatprep.mubr.msk.f32.mxu0 %vm56_vm0, %v43_v5  ;;  %554 = vmatprep.subr.bf16.mxu0 %v553_v3  ;;  %v499_v9 = vld [vmem:[%s749_s2] ss:$0 sm:$0xff]  ;;  %s659_s2 = smov 64   ;;  %s486_s13 = sshll.u32 %s660_s12, 4  ;;  %s487_s13 = int_to_ptr.vmem [resolvable:$true] %s486_s13 }
  0x2a   :  { %556 = vmatpush3.bf16.msra.mxu0 %v553_v3  ;;  %vm142_vm2 = vcmp.ge.s32.totalorder %v139_v17, %v141_v18  ;;  %s623_s14 = scalar_lea.vmem %s487_s13, 256  ;;  %p628_p3 = scmp.lt.s32.totalorder %s487_s13, %s487_s13 }
  0x2b   :  { %558 = vmatprep.subr.bf16.mxu0 %v557_v6  ;;  %v143_v20 = vsel %vm142_vm2, 0.0, %v658_v19  ;;  %p624_p2 = scmp.ne.s32.totalorder %s487_s13, %s623_s14  ;;  %p629_p4 = scmp.lt.s32.totalorder %s623_s14, %s623_s14 }
  0x2d   :  { %p630_p5 = por %p629_p4, %p628_p3 }
  0x2e   :  { %560 = vmatpush3.bf16.msra.mxu0 %v557_v6 }
  0x2f   :  { %543 = vmatprep.subr.mxu0 %v655_v8  ;;  %p631_p6 = pnand %p630_p5, %p624_p2 }
  0x31   :  { %531 = vmatmul.mubr.msk.f32.vlgmr.msra.gmra.mrb[0].mxu0 %vm56_vm0, %v44_v7 }
  0x32   :  { %545 = vmatprep.mubr.msk.f32.mxu0 %vm656_vm1, %v655_v8 }
 0x104   :  { %v532_v10 = vpop.f32.mrb[0].mxu0 }
 0x105   :  { %v129_v11 = vpop.f32.mrb[1].mxu0  ;;  %v135_v13 = vadd.f32 %v532_v10, %v499_v9 }
 0x106   :  { %v130_v12 = vadd.f32 %v499_v9, %v129_v11 }
 0x108   :  { %145 = vrot.lane.b32.xlu0 %v130_v12, %s657_s11 }
 0x10c   :  { %222 = vrot.lane.b32.xlu0 %v135_v13, %s657_s11 }
 0x17a   :  { %v146_v14 = vpop.permute.xlu0 %145 }
 0x17b   :  { %534 = vmatpush3.xpose.msk.msra.mxu1 %vm56_vm0, %v146_v14 }
 0x17c   :  { %538 = vmatprep.subr.mxu1 %v655_v8 }
 0x17e   :  { %536 = vmatmul.mubr.msk.f32.vlgmr.msra.gmra.mrb[0].mxu1 %vm56_vm0, %v130_v12  ;;  %v223_v15 = vpop.permute.xlu0 %222 }
 0x17f   :  { %539 = vmatpush3.xpose.msk.msra.mxu1 %vm56_vm0, %v223_v15  ;;  %540 = vmatprep.mubr.msk.f32.mxu1 %vm656_vm1, %v655_v8 }
 0x180   :  { %548 = vmatprep.subr.mxu1 %v655_v8 }
 0x182   :  { %541 = vmatmul.mubr.msk.f32.vlgmr.msra.gmra.mrb[2].mxu1 %vm56_vm0, %v135_v13 }
 0x183   :  { %550 = vmatprep.mubr.msk.f32.mxu1 %vm656_vm1, %v655_v8 }
 0x251   :  { %v217_v21 = vpop.f32.mrb[0].mxu1 }
 0x252   :  { %v218_v22 = vadd.f32 %v217_v21, %v143_v20  ;;  %v537_v23 = vpop.f32.mrb[1].mxu1 }
 0x254   :  { %v299_v24 = vsel %vm298_vm3, %v218_v22, -inf }
 0x255   :  { %300 = vmax.xlane.f32.xlu1 %v299_v24  ;;  %v294_v25 = vpop.f32.mrb[2].mxu1 }
 0x256   :  { %v295_v26 = vadd.f32 %v294_v25, %v143_v20  ;;  %v542_v27 = vpop.f32.mrb[3].mxu1 }
 0x258   :  { %v302_v28 = vsel %vm298_vm3, %v295_v26, -inf }
 0x259   :  { %303 = vmax.xlane.f32.xlu1 %v302_v28 }
 0x26a   :  { %327 = vrot.lane.b32.xlu1 %v130_v12, %s659_s2 }
 0x2e2   :  { %v301_v29 = vpop.xlane.xlu1 %300 }
 0x2e3   :  { %v305_v30 = vsub.f32 %v218_v22, %v301_v29 }
 0x2e5   :  { %v307_v31 = vmul.f32 1.442695, %v305_v30 }
 0x2e6   :  { %v304_v32 = vpop.xlane.xlu1 %303 }
 0x2e7   :  { %571 = vpow2.f32 %v307_v31  ;;  %v306_v33 = vsub.f32 %v295_v26, %v304_v32 }
 0x2e9   :  { %v309_v34 = vmul.f32 1.442695, %v306_v33 }
 0x2ea   :  { %v328_v35 = vpop.permute.xlu1 %327 }
 0x2eb   :  { %573 = vpow2.f32 %v309_v34  ;;  %544 = vmatpush3.msra.mxu0 %v328_v35 }
 0x2f1   :  { %v572_v36 = vpop.eup %571 }
 0x2f2   :  { %v311_v37 = vsel %vm298_vm3, %v572_v36, 0.0 }
 0x2f3   :  { %312 = vadd.xlane.f32.xlu0 %v311_v37 }
 0x2f5   :  { %v574_v38 = vpop.eup %573 }
 0x2f6   :  { %v314_v39 = vsel %vm298_vm3, %v574_v38, 0.0 }
 0x2f7   :  { %315 = vadd.xlane.f32.xlu1 %v314_v39 }
 0x308   :  { %403 = vrot.lane.b32.xlu1 %v135_v13, %s659_s2 }
 0x380   :  { %v313_v40 = vpop.xlane.xlu0 %312 }
 0x381   :  { %575 = vrcp.f32 %v313_v40 }
 0x384   :  { %v316_v41 = vpop.xlane.xlu1 %315 }
 0x385   :  { %577 = vrcp.f32 %v316_v41 }
 0x388   :  { %v404_v42 = vpop.permute.xlu1 %403 }
 0x389   :  { %549 = vmatpush3.msra.mxu1 %v404_v42 }
 0x38b   :  { %v576_v43 = vpop.eup %575 }
 0x38c   :  { %v319_v44 = vmul.f32 %v576_v43, %v313_v40 }
 0x38e   :  { %v321_v45 = vsub.f32 2.0, %v319_v44 }
 0x38f   :  { %v578_v46 = vpop.eup %577 }
 0x390   :  { %v323_v47 = vmul.f32 %v576_v43, %v321_v45  ;;  %v320_v48 = vmul.f32 %v578_v46, %v316_v41 }
 0x392   :  { %v325_v49 = vmul.f32 %v572_v36, %v323_v47  ;;  %v322_v50 = vsub.f32 2.0, %v320_v48 }
 0x394   :  { %v324_v51 = vmul.f32 %v578_v46, %v322_v50  ;;  %546 = vmatmul.mubr.msk.f32.vlgmr.msra.gmra.mrb[2].mxu0 %vm298_vm3, %v325_v49 }
 0x396   :  { %v326_v52 = vmul.f32 %v574_v38, %v324_v51 }
 0x398   :  { %551 = vmatmul.mubr.msk.f32.vlgmr.msra.gmra.mrb[4].mxu1 %vm298_vm3, %v326_v52 }
 0x467   :  { %v399_v53 = vpop.f32.mrb[2].mxu0 }
 0x468   :  { %479 = vst.msk [vmem:[#allocation7] sm:$0xff] %vm56_vm0, %v399_v53  ;;  %v547_v54 = vpop.f32.mrb[3].mxu0 }
 0x46b   :  { %v475_v55 = vpop.f32.mrb[4].mxu1 }
 0x46c   :  { %480 = vst.msk [vmem:[#allocation7 + $0x8] sm:$0xff] %vm56_vm0, %v475_v55  ;;  %v552_v56 = vpop.f32.mrb[5].mxu1 }
 0x46d   :  { %634 = shalt.err (!%p631_p6)
}
 0x46e   :  { %s635_s17 = scalar_lea.hbm %s750_s3, 256 }
 0x46f   :  { %p636_p7 = scmp.ne.s32.totalorder %s750_s3, %s635_s17  ;;  %p639_p8 = scmp.lt.u32.totalorder %s635_s17, %s750_s3 }
 0x471   :  { %p641_p9 = pnand %p639_p8, %p636_p7 }
 0x473   :  { %644 = shalt.err (!%p641_p9)
}
 0x474   :  { %492 = dma.vmem_to_hbm [thread:$0]  %s487_s13, 256, %s750_s3, [#allocation4], %s652_s22, %s652_s22, %s653_s23  }
 0x475   :  { %649 = dma.done.wait [#allocation4], 256  }
 0x476   :  { %650 = vsyncadd [#allocation4], 4294967040 }
 0x477   :  { %496 = vsyncpa [#allocation3], 1 }
 0x478   :  { %497 = vsyncpa [#allocation6], 1 }
 0x479   :  { %498 = vsyncpa [#allocation4], 1 }

</bundles_post_ra>
